<compile_context>
chip_gen: v6e
topology: v6e:2x2x1
jax: 0.10.0
libtpu: 0.0.40
codegen_flags: <defaults>
</compile_context>

<pallas_src>
import functools

import jax
import jax.numpy as jnp
from jax import lax
from jax.experimental import pallas as pl
from jax.experimental.pallas import tpu as pltpu

HIDDEN_DIM = 64
INPUT_DIM = 300
Y_DIM = 1


def _round_up(n, m):
    return ((n + m - 1) // m) * m


def _cdiv(a, b):
    return -(-a // b)


def _nonlinear_flow_kernel(y_ref, x_ref, w1_ref, b1_ref, w2_ref, b2_ref,
                           w3t_ref, bmu_ref, bls_ref, z_ref, ld_ref):
    f32 = jnp.float32
    bf16 = jnp.bfloat16
    # x streams in its native dtype (no wrapper-side cast+pad copy); the bf16
    # cast for the MXU happens here in VMEM, hidden under the DMA-bound pipeline.
    x = x_ref[...].astype(bf16)          # (TB, D)
    y = y_ref[...]                       # (1, TB)  f32

    # MLP: Linear -> ReLU -> (Dropout=id, eval) -> Linear -> ReLU -> (Dropout=id) -> Linear
    h1 = jnp.dot(x, w1_ref[...], preferred_element_type=f32) + b1_ref[...]
    h1 = jnp.maximum(h1, 0.0).astype(bf16)                    # (TB, H)
    h2 = jnp.dot(h1, w2_ref[...], preferred_element_type=f32) + b2_ref[...]
    h2 = jnp.maximum(h2, 0.0).astype(bf16)                    # (TB, H)

    # Final Linear as an NT matmul: (8, H) . (TB, H)^T -> (8, TB); rows 0/1 are
    # the mu / log_sigma heads.  Keeps the whole elementwise tail lane-dense.
    dn = (((1,), (1,)), ((), ()))
    p = lax.dot_general(w3t_ref[...], h2, dn, preferred_element_type=f32)  # (8, TB)
    mu = p[0:1, :] + bmu_ref[...]          # (1, TB)
    log_sigma = p[1:2, :] + bls_ref[...]   # (1, TB)

    inv_sigma = jnp.exp(-log_sigma)        # EUP slot instead of a VPU divide
    z = jnp.tanh((y - mu) * inv_sigma)

    z_ref[...] = z
    # y_dim == 1, so the sums over the feature dim are the identity.
    ld_ref[...] = -log_sigma + jnp.log(1.0 - z * z + 1e-6)


def _plan_tiles(B, tb_max):
    """Balanced batch tiling.  tb is always a multiple of 128 (lane-dense rows)."""
    tb_max = max(128, (tb_max // 128) * 128)   # clamp user tb_max to a lane multiple
    n = _cdiv(B, tb_max)
    # v7x megacore: guarantee >= 2 grid steps so both TensorCores get work
    # (one extra ~0.35us step on single-TC v5e/v6e, negligible).
    if n == 1 and B > 128:
        n = 2
    tb = _round_up(_cdiv(B, n), 128)
    return tb, n * tb, n


def _vmem_limit_bytes(tb, D, H, x_itemsize):
    """Explicit VMEM budget for the chosen tile (x is lane-padded D -> 384 in VMEM)."""
    d_pad = _round_up(D, 128)
    x_buf = tb * d_pad * x_itemsize          # one pipeline buffer (double-buffered)
    x_cast = tb * d_pad * 2                  # in-kernel bf16 copy of the x tile
    h = tb * H * 4                           # f32 h1 / h2
    hb = tb * H * 2                          # bf16 h1 / h2
    rows = 8 * tb * 4 * 4                    # p / y / z / log_det rows (generous)
    est = 2 * x_buf + x_cast + 2 * (h + hb) + rows + (2 << 20)   # weights + margin
    est = _round_up(est, 1 << 20)
    # Above the 16/32 MiB scoped defaults, well inside v7x's 64 MiB physical VMEM.
    return int(min(max(est, 32 << 20), 56 << 20))


@functools.partial(jax.jit, static_argnames=("tb_max",))
def nonlinear_flow_forward(y, x, w1, b1, w2, b2, w3, b3, *, tb_max=8192):
    """y: (B,) or (B,1); x: (B, ...) in f32 or bf16.  Returns (z (B,1), log_det (B,))."""
    B = x.shape[0]
    x2 = x.reshape(B, -1)                    # view-reshape; no copy for contiguous x
    D = x2.shape[1]
    H = w1.shape[1]

    tb, Bp, n = _plan_tiles(B, tb_max)
    grid = (n,)

    # Pad the batch only when it doesn't divide the tile; x keeps its caller
    # dtype so the kernel streams it straight from HBM.
    y_row = y.reshape(1, B).astype(jnp.float32)
    if Bp != B:
        x2 = jnp.pad(x2, ((0, Bp - B), (0, 0)))
        y_row = jnp.pad(y_row, ((0, 0), (0, Bp - B)))

    # Weights in bf16 for the MXU (f32 accumulation), biases in f32.
    w1b = w1.astype(jnp.bfloat16)                       # (D, H)
    w2b = w2.astype(jnp.bfloat16)                       # (H, H)
    b1r = b1.reshape(1, H).astype(jnp.float32)
    b2r = b2.reshape(1, H).astype(jnp.float32)
    # Last layer transposed and zero-padded to 8 sublanes: row 0 = mu, row 1 = log_sigma.
    w3t = jnp.zeros((8, H), jnp.bfloat16).at[0:2, :].set(w3.T.astype(jnp.bfloat16))
    bmu = b3[0:1].reshape(1, 1).astype(jnp.float32)
    bls = b3[1:2].reshape(1, 1).astype(jnp.float32)

    row_spec = pl.BlockSpec((1, tb), lambda i: (0, i))
    const = lambda shape: pl.BlockSpec(shape, lambda i: (0, 0))

    # Note: if a profile shows DMA bubbles at step boundaries, a cheap experiment
    # is pipeline_mode=pl.Buffered(3) on the x BlockSpec only (watch VMEM budget).
    z, ld = pl.pallas_call(
        _nonlinear_flow_kernel,
        out_shape=(jax.ShapeDtypeStruct((1, Bp), jnp.float32),
                   jax.ShapeDtypeStruct((1, Bp), jnp.float32)),
        grid=grid,
        in_specs=[
            row_spec,                                     # y    (1, Bp)
            pl.BlockSpec((tb, D), lambda i: (i, 0)),      # x    (Bp, D), native dtype
            const((D, H)), const((1, H)),                 # w1, b1
            const((H, H)), const((1, H)),                 # w2, b2
            const((8, H)), const((1, 1)), const((1, 1)),  # w3^T, b_mu, b_ls
        ],
        out_specs=(row_spec, row_spec),
        compiler_params=pltpu.CompilerParams(
            dimension_semantics=("parallel",),
            vmem_limit_bytes=_vmem_limit_bytes(tb, D, H, x2.dtype.itemsize)),
    )(y_row, x2, w1b, b1r, w2b, b2r, w3t, bmu, bls)

    return z[0, :B].reshape(B, 1), ld[0, :B]


def init_params(key, input_dim=INPUT_DIM, hidden_dim=HIDDEN_DIM, y_dim=Y_DIM):
    """Deterministic init mimicking nn.Linear default: U(-1/sqrt(fan_in), 1/sqrt(fan_in))."""
    ks = jax.random.split(key, 6)

    def lin(kw, kb, fan_in, fan_out):
        bound = 1.0 / jnp.sqrt(float(fan_in))
        w = jax.random.uniform(kw, (fan_in, fan_out), jnp.float32, -bound, bound)
        b = jax.random.uniform(kb, (fan_out,), jnp.float32, -bound, bound)
        return w, b

    w1, b1 = lin(ks[0], ks[1], input_dim, hidden_dim)
    w2, b2 = lin(ks[2], ks[3], hidden_dim, hidden_dim)
    w3, b3 = lin(ks[4], ks[5], hidden_dim, y_dim * 2)
    return w1, b1, w2, b2, w3, b3


def reference_forward(y, x, w1, b1, w2, b2, w3, b3):
    """Pure-JAX reference using the same bf16-input / f32-accumulate matmul scheme."""
    f32, bf = jnp.float32, jnp.bfloat16
    xb = x.reshape(x.shape[0], -1).astype(bf)
    h = jnp.maximum(jnp.dot(xb, w1.astype(bf), preferred_element_type=f32) + b1, 0.0)
    h = jnp.maximum(jnp.dot(h.astype(bf), w2.astype(bf), preferred_element_type=f32) + b2, 0.0)
    p = jnp.dot(h.astype(bf), w3.astype(bf), preferred_element_type=f32) + b3
    mu, log_sigma = p[:, :Y_DIM], p[:, Y_DIM:]
    z = jnp.tanh((y.reshape(-1, 1) - mu) / jnp.exp(log_sigma))
    ld = -jnp.sum(log_sigma, -1) + jnp.sum(jnp.log(1.0 - z ** 2 + 1e-6), -1)
    return z, ld


if __name__ == "__main__":
    key = jax.random.PRNGKey(0)
    kp, kx, ky, kx2, ky2 = jax.random.split(key, 5)

    params = init_params(kp)

    # Small single-tile case.
    B = 8
    x = jax.random.normal(kx, (B, INPUT_DIM), jnp.float32)
    y = jax.random.normal(ky, (B,), jnp.float32)
    z, log_det = nonlinear_flow_forward(y, x, *params)
    jax.block_until_ready((z, log_det))
    z_ref, ld_ref = reference_forward(y, x, *params)
    assert z.shape == (B, Y_DIM) and log_det.shape == (B,)
    assert jnp.allclose(z, z_ref, atol=1e-3), "z mismatch (B=8)"
    assert jnp.allclose(log_det, ld_ref, atol=1e-2), "log_det mismatch (B=8)"

    # Ragged multi-tile case (exercises balanced tiling + batch padding + 2-step grid).
    B2 = 300
    x2 = jax.random.normal(kx2, (B2, INPUT_DIM), jnp.float32)
    y2 = jax.random.normal(ky2, (B2,), jnp.float32)
    z2, ld2 = nonlinear_flow_forward(y2, x2, *params)
    jax.block_until_ready((z2, ld2))
    z2_ref, ld2_ref = reference_forward(y2, x2, *params)
    assert z2.shape == (B2, Y_DIM) and ld2.shape == (B2,)
    assert jnp.allclose(z2, z2_ref, atol=1e-3), "z mismatch (B=300)"
    assert jnp.allclose(ld2, ld2_ref, atol=1e-2), "log_det mismatch (B=300)"

    print("KERNEL_OK")
</pallas_src>

<mosaic_0001>
module attributes {stable_mosaic.version = 11 : i64} {
  func.func @_nonlinear_flow_kernel(%arg0: i32, %arg1: memref<1x128xf32, #tpu.memory_space<vmem>>, %arg2: memref<128x300xf32, #tpu.memory_space<vmem>>, %arg3: memref<300x64xbf16, #tpu.memory_space<vmem>>, %arg4: memref<1x64xf32, #tpu.memory_space<vmem>>, %arg5: memref<64x64xbf16, #tpu.memory_space<vmem>>, %arg6: memref<1x64xf32, #tpu.memory_space<vmem>>, %arg7: memref<8x64xbf16, #tpu.memory_space<vmem>>, %arg8: memref<1x1xf32, #tpu.memory_space<vmem>>, %arg9: memref<1x1xf32, #tpu.memory_space<vmem>>, %arg10: memref<1x128xf32, #tpu.memory_space<vmem>>, %arg11: memref<1x128xf32, #tpu.memory_space<vmem>>) attributes {dimension_semantics = [#tpu.dimension_semantics<parallel>], iteration_bounds = array<i64: 1>, scalar_prefetch = 0 : i64, scratch_operands = 0 : i64, tpu.core_type = #tpu.core_type<tc>, window_params = [{transform_indices = @transform_0, window_bounds = array<i64: 1, 128>}, {transform_indices = @transform_1, window_bounds = array<i64: 128, 300>}, {pipeline_mode = #tpu.pipeline_mode<synchronous>, transform_indices = @transform_2, window_bounds = array<i64: 300, 64>}, {pipeline_mode = #tpu.pipeline_mode<synchronous>, transform_indices = @transform_3, window_bounds = array<i64: 1, 64>}, {pipeline_mode = #tpu.pipeline_mode<synchronous>, transform_indices = @transform_4, window_bounds = array<i64: 64, 64>}, {pipeline_mode = #tpu.pipeline_mode<synchronous>, transform_indices = @transform_5, window_bounds = array<i64: 1, 64>}, {pipeline_mode = #tpu.pipeline_mode<synchronous>, transform_indices = @transform_6, window_bounds = array<i64: 8, 64>}, {pipeline_mode = #tpu.pipeline_mode<synchronous>, transform_indices = @transform_7, window_bounds = array<i64: 1, 1>}, {pipeline_mode = #tpu.pipeline_mode<synchronous>, transform_indices = @transform_8, window_bounds = array<i64: 1, 1>}, {transform_indices = @transform_9, window_bounds = array<i64: 1, 128>}, {transform_indices = @transform_10, window_bounds = array<i64: 1, 128>}]} {
    %c0 = arith.constant 0 : index
    %c0_0 = arith.constant 0 : index
    %0 = vector.load %arg2[%c0, %c0_0] : memref<128x300xf32, #tpu.memory_space<vmem>>, vector<128x300xf32>
    %1 = arith.truncf %0 : vector<128x300xf32> to vector<128x300xbf16>
    %c0_1 = arith.constant 0 : index
    %c0_2 = arith.constant 0 : index
    %2 = vector.load %arg1[%c0_1, %c0_2] : memref<1x128xf32, #tpu.memory_space<vmem>>, vector<1x128xf32>
    %c0_3 = arith.constant 0 : index
    %c0_4 = arith.constant 0 : index
    %3 = vector.load %arg3[%c0_3, %c0_4] : memref<300x64xbf16, #tpu.memory_space<vmem>>, vector<300x64xbf16>
    %cst = arith.constant dense<0.000000e+00> : vector<128x64xf32>
    %4 = tpu.matmul %1, %3, %cst {dimension_numbers = #tpu.dot_dimension_numbers<[1], [0], [0], [1], [0, 0, 1, 1], [], []>} : vector<128x300xbf16>, vector<300x64xbf16>, vector<128x64xf32> -> vector<128x64xf32>
    %c0_5 = arith.constant 0 : index
    %c0_6 = arith.constant 0 : index
    %5 = vector.load %arg4[%c0_5, %c0_6] : memref<1x64xf32, #tpu.memory_space<vmem>>, vector<1x64xf32>
    %6 = vector.broadcast %5 : vector<1x64xf32> to vector<128x64xf32>
    %7 = arith.addf %4, %6 : vector<128x64xf32>
    %cst_7 = arith.constant 0.000000e+00 : f32
    %8 = vector.broadcast %cst_7 : f32 to vector<128x64xf32>
    %9 = arith.maximumf %7, %8 : vector<128x64xf32>
    %10 = arith.truncf %9 : vector<128x64xf32> to vector<128x64xbf16>
    %c0_8 = arith.constant 0 : index
    %c0_9 = arith.constant 0 : index
    %11 = vector.load %arg5[%c0_8, %c0_9] : memref<64x64xbf16, #tpu.memory_space<vmem>>, vector<64x64xbf16>
    %cst_10 = arith.constant dense<0.000000e+00> : vector<128x64xf32>
    %12 = tpu.matmul %10, %11, %cst_10 {dimension_numbers = #tpu.dot_dimension_numbers<[1], [0], [0], [1], [0, 0, 1, 1], [], []>} : vector<128x64xbf16>, vector<64x64xbf16>, vector<128x64xf32> -> vector<128x64xf32>
    %c0_11 = arith.constant 0 : index
    %c0_12 = arith.constant 0 : index
    %13 = vector.load %arg6[%c0_11, %c0_12] : memref<1x64xf32, #tpu.memory_space<vmem>>, vector<1x64xf32>
    %14 = vector.broadcast %13 : vector<1x64xf32> to vector<128x64xf32>
    %15 = arith.addf %12, %14 : vector<128x64xf32>
    %cst_13 = arith.constant 0.000000e+00 : f32
    %16 = vector.broadcast %cst_13 : f32 to vector<128x64xf32>
    %17 = arith.maximumf %15, %16 : vector<128x64xf32>
    %18 = arith.truncf %17 : vector<128x64xf32> to vector<128x64xbf16>
    %c0_14 = arith.constant 0 : index
    %c0_15 = arith.constant 0 : index
    %19 = vector.load %arg7[%c0_14, %c0_15] : memref<8x64xbf16, #tpu.memory_space<vmem>>, vector<8x64xbf16>
    %cst_16 = arith.constant dense<0.000000e+00> : vector<8x128xf32>
    %20 = tpu.matmul %19, %18, %cst_16 {dimension_numbers = #tpu.dot_dimension_numbers<[1], [1], [0], [0], [0, 0, 1, 0], [], []>} : vector<8x64xbf16>, vector<128x64xbf16>, vector<8x128xf32> -> vector<8x128xf32>
    %21 = vector.extract_strided_slice %20 {offsets = [0, 0], sizes = [1, 128], strides = [1, 1]} : vector<8x128xf32> to vector<1x128xf32>
    %c0_17 = arith.constant 0 : index
    %c0_18 = arith.constant 0 : index
    %22 = vector.load %arg8[%c0_17, %c0_18] : memref<1x1xf32, #tpu.memory_space<vmem>>, vector<1x1xf32>
    %23 = vector.broadcast %22 : vector<1x1xf32> to vector<1x128xf32>
    %24 = arith.addf %21, %23 : vector<1x128xf32>
    %25 = vector.extract_strided_slice %20 {offsets = [1, 0], sizes = [1, 128], strides = [1, 1]} : vector<8x128xf32> to vector<1x128xf32>
    %c0_19 = arith.constant 0 : index
    %c0_20 = arith.constant 0 : index
    %26 = vector.load %arg9[%c0_19, %c0_20] : memref<1x1xf32, #tpu.memory_space<vmem>>, vector<1x1xf32>
    %27 = vector.broadcast %26 : vector<1x1xf32> to vector<1x128xf32>
    %28 = arith.addf %25, %27 : vector<1x128xf32>
    %cst_21 = arith.constant 0.000000e+00 : f32
    %29 = vector.broadcast %cst_21 : f32 to vector<1x128xf32>
    %30 = arith.subf %29, %28 : vector<1x128xf32>
    %31 = math.exp %30 : vector<1x128xf32>
    %32 = arith.subf %2, %24 : vector<1x128xf32>
    %33 = arith.mulf %32, %31 : vector<1x128xf32>
    %34 = math.tanh %33 : vector<1x128xf32>
    %c0_22 = arith.constant 0 : index
    %c0_23 = arith.constant 0 : index
    %35 = vector.load %arg10[%c0_22, %c0_23] : memref<1x128xf32, #tpu.memory_space<vmem>>, vector<1x128xf32>
    tpu.vector_store %arg10[%c0_22, %c0_23], %34 {strides = array<i32>} : memref<1x128xf32, #tpu.memory_space<vmem>>, vector<1x128xf32>,
    %cst_24 = arith.constant 0.000000e+00 : f32
    %36 = vector.broadcast %cst_24 : f32 to vector<1x128xf32>
    %37 = arith.subf %36, %28 : vector<1x128xf32>
    %38 = arith.mulf %34, %34 : vector<1x128xf32>
    %cst_25 = arith.constant 1.000000e+00 : f32
    %39 = vector.broadcast %cst_25 : f32 to vector<1x128xf32>
    %40 = arith.subf %39, %38 : vector<1x128xf32>
    %cst_26 = arith.constant 9.99999997E-7 : f32
    %41 = vector.broadcast %cst_26 : f32 to vector<1x128xf32>
    %42 = arith.addf %40, %41 : vector<1x128xf32>
    %43 = math.log %42 : vector<1x128xf32>
    %44 = arith.addf %37, %43 : vector<1x128xf32>
    %c0_27 = arith.constant 0 : index
    %c0_28 = arith.constant 0 : index
    %45 = vector.load %arg11[%c0_27, %c0_28] : memref<1x128xf32, #tpu.memory_space<vmem>>, vector<1x128xf32>
    tpu.vector_store %arg11[%c0_27, %c0_28], %44 {strides = array<i32>} : memref<1x128xf32, #tpu.memory_space<vmem>>, vector<1x128xf32>,
    return
  }
  func.func @transform_0(%arg0: i32) -> (i32, i32) {
    %c0_i32 = arith.constant 0 : i32
    %c0_i32_0 = arith.constant 0 : i32
    return %c0_i32, %arg0 : i32, i32
  }
  func.func @transform_1(%arg0: i32) -> (i32, i32) {
    %c0_i32 = arith.constant 0 : i32
    %c0_i32_0 = arith.constant 0 : i32
    return %arg0, %c0_i32 : i32, i32
  }
  func.func @transform_2(%arg0: i32) -> (i32, i32) {
    %c0_i32 = arith.constant 0 : i32
    %c0_i32_0 = arith.constant 0 : i32
    %c0_i32_1 = arith.constant 0 : i32
    return %c0_i32, %c0_i32_0 : i32, i32
  }
  func.func @transform_3(%arg0: i32) -> (i32, i32) {
    %c0_i32 = arith.constant 0 : i32
    %c0_i32_0 = arith.constant 0 : i32
    %c0_i32_1 = arith.constant 0 : i32
    return %c0_i32, %c0_i32_0 : i32, i32
  }
  func.func @transform_4(%arg0: i32) -> (i32, i32) {
    %c0_i32 = arith.constant 0 : i32
    %c0_i32_0 = arith.constant 0 : i32
    %c0_i32_1 = arith.constant 0 : i32
    return %c0_i32, %c0_i32_0 : i32, i32
  }
  func.func @transform_5(%arg0: i32) -> (i32, i32) {
    %c0_i32 = arith.constant 0 : i32
    %c0_i32_0 = arith.constant 0 : i32
    %c0_i32_1 = arith.constant 0 : i32
    return %c0_i32, %c0_i32_0 : i32, i32
  }
  func.func @transform_6(%arg0: i32) -> (i32, i32) {
    %c0_i32 = arith.constant 0 : i32
    %c0_i32_0 = arith.constant 0 : i32
    %c0_i32_1 = arith.constant 0 : i32
    return %c0_i32, %c0_i32_0 : i32, i32
  }
  func.func @transform_7(%arg0: i32) -> (i32, i32) {
    %c0_i32 = arith.constant 0 : i32
    %c0_i32_0 = arith.constant 0 : i32
    %c0_i32_1 = arith.constant 0 : i32
    return %c0_i32, %c0_i32_0 : i32, i32
  }
  func.func @transform_8(%arg0: i32) -> (i32, i32) {
    %c0_i32 = arith.constant 0 : i32
    %c0_i32_0 = arith.constant 0 : i32
    %c0_i32_1 = arith.constant 0 : i32
    return %c0_i32, %c0_i32_0 : i32, i32
  }
  func.func @transform_9(%arg0: i32) -> (i32, i32) {
    %c0_i32 = arith.constant 0 : i32
    %c0_i32_0 = arith.constant 0 : i32
    return %c0_i32, %arg0 : i32, i32
  }
  func.func @transform_10(%arg0: i32) -> (i32, i32) {
    %c0_i32 = arith.constant 0 : i32
    %c0_i32_0 = arith.constant 0 : i32
    return %c0_i32, %arg0 : i32, i32
  }
}

</mosaic_0001>

<bundles_post_ra>
// kernel: nonlinear_flow_forward.1
= control target key start
LH: loop header
LB: loop body
LE: loop exit
PB: predicated region body
PF: predicated region fallthrough
CT: control target
= control target key end

     0   :  { %vm295_vm0 = vcmask 1045504   ;;  %vm270_vm1 = vcmask 359424   ;;  %vm556_vm2 = vcmask 523264   ;;  %vm1077_vm3 = vmmov 0   ;;  %s1448_s2 = inlined_call_operand.vmem [shape: bf16[300,64], index: 2, kind: input, shape index: {}]   ;;  %s1449_s1 = inlined_call_operand.vmem [shape: f32[128,300], index: 1, kind: input, shape index: {}]   ;;  %s1450_s4 = inlined_call_operand.vmem [shape: bf16[64,64], index: 4, kind: input, shape index: {}]   ;;  %s1451_s3 = inlined_call_operand.vmem [shape: f32[1,64], index: 3, kind: input, shape index: {}]   ;;  %s1452_s8 = inlined_call_operand.<no memory space> [shape: f32[1,1], index: 8, kind: input, shape index: {}]   ;;  %s1453_s7 = inlined_call_operand.<no memory space> [shape: f32[1,1], index: 7, kind: input, shape index: {}]   ;;  %s1454_s5 = inlined_call_operand.vmem [shape: f32[1,64], index: 5, kind: input, shape index: {}]   ;;  %s1455_s6 = inlined_call_operand.vmem [shape: bf16[8,64], index: 6, kind: input, shape index: {}]   ;;  %s1456_s0 = inlined_call_operand.vmem [shape: f32[1,128], index: 0, kind: input, shape index: {}]   ;;  %s1457_s9 = inlined_call_operand.vmem [shape: f32[1,128], index: 9, kind: output, shape index: {0}]   ;;  %s1458_s10 = inlined_call_operand.vmem [shape: f32[1,128], index: 10, kind: output, shape index: {1}]  }
   0x1   :  { %v1047_v0 = vld [vmem:[%s1448_s2 + $0x78] sm:$0xff]   ;;  %v1049_v2 = vld [vmem:[%s1448_s2 + $0x70] sm:$0xff]   ;;  %v1051_v4 = vld [vmem:[%s1448_s2 + $0x68] sm:$0xff]  }
   0x2   :  { %v1048_v1 = vld [vmem:[%s1448_s2 + $0x38] sm:$0xff]   ;;  %879 = vmatprep.subr.bf16.mxu0 %v1047_v0  ;;  %v1050_v3 = vld [vmem:[%s1448_s2 + $0x30] sm:$0xff]   ;;  %v1052_v5 = vld [vmem:[%s1448_s2 + $0x28] sm:$0xff]  }
   0x3   :  { %880 = vmatpush3.bf16.msra.mxu0 %v1048_v1  ;;  %v1053_v6 = vld [vmem:[%s1448_s2 + $0x60] sm:$0xff]   ;;  %v1055_v8 = vld [vmem:[%s1448_s2 + $0x58] sm:$0xff]   ;;  %v1060_v9 = vld [vmem:[%s1448_s2 + $0x90] sm:$0x3f]  }
   0x4   :  { %881 = vmatprep.subr.bf16.mxu0 %v1049_v2  ;;  %v1054_v7 = vld [vmem:[%s1448_s2 + $0x20] sm:$0xff]   ;;  %v1056_v10 = vld [vmem:[%s1448_s2 + $0x18] sm:$0xff]   ;;  %v1057_v11 = vld [vmem:[%s1448_s2 + $0x50] sm:$0xff]   ;;  %1041 = vmatprep.subr.msk.bf16.mxu1 %vm295_vm0, %v1060_v9  ;;  %v297_v12 = vsel %vm295_vm0, %v1060_v9, 0 }
   0x5   :  { %976 = vmatpush3.bf16.msra.mxu1 %v297_v12  ;;  %v1063_v13 = vld [vmem:[%s1448_s2 + $0x88] sm:$0xff]   ;;  %v1058_v14 = vld [vmem:[%s1448_s2 + $0x10] sm:$0xff]   ;;  %v43_v16 = vld [vmem:[%s1449_s1 + $0x20] sm:$0xff] }
   0x6   :  { %977 = vmatprep.subr.bf16.mxu1 %v1063_v13  ;;  %v40_v15 = vld [vmem:[%s1449_s1 + $0x8] sm:$0xff]  ;;  %v1065_v19 = vld [vmem:[%s1448_s2 + $0x80] sm:$0xff]   ;;  %v41_v20 = vld [vmem:[%s1449_s1 + $0x10] sm:$0xff] }
   0x7   :  { %882 = vmatpush3.bf16.msra.mxu0 %v1050_v3  ;;  %v1059_v17 = vld [vmem:[%s1448_s2 + $0x48] sm:$0xff]   ;;  %v88_v18 = vpack.c.bf16 %v43_v16, %v40_v15  ;;  %v47_v23 = vld [vmem:[%s1449_s1 + $0x40] sm:$0xff]  ;;  %v50_v24 = vld [vmem:[%s1449_s1 + $0x58] sm:$0xff] }
   0x8   :  { %883 = vmatprep.subr.bf16.mxu0 %v1051_v4  ;;  %v44_v21 = vld [vmem:[%s1449_s1 + $0x28] sm:$0xff]  ;;  %v92_v26 = vpack.c.bf16 %v50_v24, %v47_v23  ;;  %v1062_v27 = vld [vmem:[%s1448_s2 + $0x40] sm:$0xff]   ;;  %v53_v28 = vld [vmem:[%s1449_s1 + $0x70] sm:$0xff] }
   0x9   :  { %978 = vmatpush3.bf16.msra.mxu1 %v1063_v13  ;;  %331 = vmatprep.mubr.bf16.mxu0 %v88_v18  ;;  %v89_v22 = vpack.c.bf16 %v44_v21, %v41_v20  ;;  %v1061_v25 = vld [vmem:[%s1448_s2 + $0x8] sm:$0xff]   ;;  %v1064_v31 = vld [vmem:[%s1448_s2] sm:$0xff]   ;;  %v42_v33 = vld [vmem:[%s1449_s1 + $0x18] sm:$0xff] }
   0xa   :  { %979 = vmatprep.subr.bf16.mxu1 %v1065_v19  ;;  %v56_v29 = vld [vmem:[%s1449_s1 + $0x88] sm:$0xff]  ;;  %v39_v32 = vld [vmem:[%s1449_s1] sm:$0xff]  ;;  %v46_v34 = vld [vmem:[%s1449_s1 + $0x38] sm:$0xff] }
   0xb   :  { %884 = vmatpush3.bf16.msra.mxu0 %v1052_v5  ;;  %981 = vmatprep.mubr.msk.bf16.mxu1 %vm270_vm1, %v89_v22  ;;  %v95_v30 = vpack.c.bf16 %v56_v29, %v53_v28  ;;  %v49_v35 = vld [vmem:[%s1449_s1 + $0x50] sm:$0xff]  ;;  %v59_v36 = vld [vmem:[%s1449_s1 + $0xa0] sm:$0xff]  ;;  %v62_v37 = vld [vmem:[%s1449_s1 + $0xb8] sm:$0xff]  ;;  %v87_v40 = vpack.c.bf16 %v42_v33, %v39_v32 }
   0xc   :  { %885 = vmatprep.subr.bf16.mxu0 %v1053_v6  ;;  %v65_v38 = vld [vmem:[%s1449_s1 + $0xd0] sm:$0xff]  ;;  %v68_v39 = vld [vmem:[%s1449_s1 + $0xe8] sm:$0xff]  ;;  %v91_v41 = vpack.c.bf16 %v49_v35, %v46_v34  ;;  %v98_v42 = vpack.c.bf16 %v62_v37, %v59_v36  ;;  %v55_v47 = vld [vmem:[%s1449_s1 + $0x80] sm:$0xff] }
   0xd   :  { %980 = vmatpush3.bf16.msra.mxu1 %v1065_v19  ;;  %v101_v43 = vpack.c.bf16 %v68_v39, %v65_v38  ;;  %v45_v44 = vld [vmem:[%s1449_s1 + $0x30] sm:$0xff]  ;;  %v48_v45 = vld [vmem:[%s1449_s1 + $0x48] sm:$0xff]  ;;  %v71_v48 = vld [vmem:[%s1449_s1 + $0x100] sm:$0xff] }
   0xe   :  { %v52_v46 = vld [vmem:[%s1449_s1 + $0x68] sm:$0xff]  ;;  %v74_v49 = vld [vmem:[%s1449_s1 + $0x118] sm:$0xff]  ;;  %v77_v50 = vld [vmem:[%s1449_s1 + $0x130] sm:$0xff]  ;;  %v90_v52 = vpack.c.bf16 %v48_v45, %v45_v44 }
   0xf   :  { %886 = vmatpush3.bf16.msra.mxu0 %v1054_v7  ;;  %v80_v51 = vld [vmem:[%s1449_s1 + $0x148] sm:$0xff]  ;;  %v94_v53 = vpack.c.bf16 %v55_v47, %v52_v46  ;;  %v104_v54 = vpack.c.bf16 %v74_v49, %v71_v48  ;;  %v51_v56 = vld [vmem:[%s1449_s1 + $0x60] sm:$0xff]  ;;  %v54_v57 = vld [vmem:[%s1449_s1 + $0x78] sm:$0xff] }
  0x10   :  { %887 = vmatprep.subr.bf16.mxu0 %v1055_v8  ;;  %982 = vmatmul.mubr.msk.bf16.vlgmr.msra.gmra.mxu1 %vm270_vm1, %v92_v26  ;;  %v107_v55 = vpack.c.bf16 %v80_v51, %v77_v50  ;;  %v58_v58 = vld [vmem:[%s1449_s1 + $0x98] sm:$0xff]  ;;  %v61_v59 = vld [vmem:[%s1449_s1 + $0xb0] sm:$0xff]  ;;  %v83_v60 = vld [vmem:[%s1449_s1 + $0x160] sm:$0xff]  ;;  %v93_v62 = vpack.c.bf16 %v54_v57, %v51_v56 }
  0x11   :  { %985 = vmatprep.mubr.msk.bf16.mxu1 %vm270_vm1, %v95_v30  ;;  %v86_v61 = vld [vmem:[%s1449_s1 + $0x178] sm:$0xff]  ;;  %v97_v63 = vpack.c.bf16 %v61_v59, %v58_v58  ;;  %v57_v1 = vld [vmem:[%s1449_s1 + $0x90] sm:$0xff]  ;;  %v60_v2 = vld [vmem:[%s1449_s1 + $0xa8] sm:$0xff] }
  0x12   :  { %v110_v0 = vpack.c.bf16 %v86_v61, %v83_v60  ;;  %v64_v3 = vld [vmem:[%s1449_s1 + $0xc8] sm:$0xff]  ;;  %v67_v4 = vld [vmem:[%s1449_s1 + $0xe0] sm:$0xff]  ;;  %v96_v5 = vpack.c.bf16 %v60_v2, %v57_v1  ;;  %v66_v8 = vld [vmem:[%s1449_s1 + $0xd8] sm:$0xff] }
  0x13   :  { %888 = vmatpush3.bf16.msra.mxu0 %v1056_v10  ;;  %v100_v6 = vpack.c.bf16 %v67_v4, %v64_v3  ;;  %v63_v7 = vld [vmem:[%s1449_s1 + $0xc0] sm:$0xff]  ;;  %v70_v9 = vld [vmem:[%s1449_s1 + $0xf8] sm:$0xff]  ;;  %v73_v10 = vld [vmem:[%s1449_s1 + $0x110] sm:$0xff] }
  0x14   :  { %889 = vmatprep.subr.bf16.mxu0 %v1057_v11  ;;  %v99_v11 = vpack.c.bf16 %v66_v8, %v63_v7  ;;  %v103_v12 = vpack.c.bf16 %v73_v10, %v70_v9  ;;  %v69_v13 = vld [vmem:[%s1449_s1 + $0xf0] sm:$0xff]  ;;  %v76_v15 = vld [vmem:[%s1449_s1 + $0x128] sm:$0xff]  ;;  %v79_v16 = vld [vmem:[%s1449_s1 + $0x140] sm:$0xff] }
  0x15   :  { %v106_v18 = vpack.c.bf16 %v79_v16, %v76_v15  ;;  %v75_v19 = vld [vmem:[%s1449_s1 + $0x120] sm:$0xff]  ;;  %v78_v20 = vld [vmem:[%s1449_s1 + $0x138] sm:$0xff]  ;;  %v85_v22 = vld [vmem:[%s1449_s1 + $0x170] sm:$0xff] }
  0x16   :  { %v82_v21 = vld [vmem:[%s1449_s1 + $0x158] sm:$0xff]  ;;  %v105_v23 = vpack.c.bf16 %v78_v20, %v75_v19  ;;  %v84_v26 = vld [vmem:[%s1449_s1 + $0x168] sm:$0xff]  ;;  %v1067_v29 = vld [vmem:[%s1450_s4 + $0x10] sm:$0xff]  }
  0x17   :  { %890 = vmatpush3.bf16.msra.mxu0 %v1058_v14  ;;  %v72_v14 = vld [vmem:[%s1449_s1 + $0x108] sm:$0xff]  ;;  %v109_v24 = vpack.c.bf16 %v85_v22, %v82_v21  ;;  %v1066_v28 = vld [vmem:[%s1450_s4 + $0x18] sm:$0xff]   ;;  %v1359_v36 = vld [vmem:[%s1451_s3] ss:$0 sm:$0xff] }
  0x18   :  { %891 = vmatprep.subr.bf16.mxu0 %v1059_v17  ;;  %986 = vmatmul.mubr.msk.bf16.gmra.mxu1 %vm270_vm1, %v98_v42  ;;  %v102_v17 = vpack.c.bf16 %v72_v14, %v69_v13  ;;  %v1068_v30 = vld [vmem:[%s1450_s4 + $0x8] sm:$0xff]  }
  0x19   :  { %989 = vmatprep.mubr.msk.bf16.mxu1 %vm270_vm1, %v101_v43  ;;  %997 = vmatprep.subr.bf16.mxu1 %v1066_v28 }
  0x1a   :  { %998 = vmatpush3.bf16.msra.mxu1 %v1066_v28 }
  0x1b   :  { %892 = vmatpush3.bf16.msra.mxu0 %v1061_v25  ;;  %v81_v25 = vld [vmem:[%s1449_s1 + $0x150] sm:$0xff]  ;;  %999 = vmatprep.subr.bf16.mxu1 %v1067_v29 }
  0x1c   :  { %893 = vmatprep.subr.bf16.mxu0 %v1062_v27  ;;  %v108_v27 = vpack.c.bf16 %v84_v26, %v81_v25 }
  0x1e   :  { %1000 = vmatpush3.bf16.msra.mxu1 %v1067_v29 }
  0x1f   :  { %894 = vmatpush3.bf16.msra.mxu0 %v1064_v31  ;;  %1001 = vmatprep.subr.bf16.mxu1 %v1068_v30  ;;  %v1069_v31 = vld [vmem:[%s1450_s4] sm:$0xff]  }
  0x20   :  { %990 = vmatmul.mubr.msk.bf16.gmra.mxu1 %vm270_vm1, %v104_v54 }
  0x21   :  { %993 = vmatprep.mubr.msk.bf16.mxu1 %vm270_vm1, %v107_v55 }
  0x22   :  { %332 = vmatmul.mubr.bf16.vlgmr.msra.gmra.mxu0 %v87_v40  ;;  %1002 = vmatpush3.bf16.msra.mxu1 %v1068_v30 }
  0x23   :  { %339 = vmatprep.mubr.bf16.mxu0 %v91_v41  ;;  %1003 = vmatprep.subr.bf16.mxu1 %v1069_v31 }
  0x26   :  { %1004 = vmatpush3.bf16.msra.mxu1 %v1069_v31 }
  0x28   :  { %994 = vmatmul.mubr.msk.bf16.gmra.mxu1 %vm270_vm1, %v110_v0 }
  0x2a   :  { %340 = vmatmul.mubr.bf16.gmra.mxu0 %v90_v52 }
  0x2b   :  { %347 = vmatprep.mubr.bf16.mxu0 %v94_v53 }
  0x32   :  { %348 = vmatmul.mubr.bf16.gmra.mxu0 %v93_v62 }
  0x33   :  { %355 = vmatprep.mubr.bf16.mxu0 %v97_v63 }
  0x3a   :  { %356 = vmatmul.mubr.bf16.gmra.mxu0 %v96_v5 }
  0x3b   :  { %363 = vmatprep.mubr.bf16.mxu0 %v100_v6 }
  0x42   :  { %364 = vmatmul.mubr.bf16.gmra.mxu0 %v99_v11 }
  0x43   :  { %371 = vmatprep.mubr.bf16.mxu0 %v103_v12 }
  0x4a   :  { %372 = vmatmul.mubr.bf16.gmra.mxu0 %v102_v17 }
  0x4b   :  { %379 = vmatprep.mubr.bf16.mxu0 %v106_v18 }
  0x52   :  { %380 = vmatmul.mubr.bf16.gmra.mxu0 %v105_v23 }
  0x53   :  { %387 = vmatprep.mubr.bf16.mxu0 %v109_v24 }
  0x5a   :  { %388 = vmatmul.mubr.bf16.gmra.mxu0 %v108_v27 }
  0xd0   :  { %v983_v32 = vpop.f32.mrf.mxu1 }
  0xd2   :  { %v430_v34 = vpop.f32.mrf.mxu1 }
  0xd4   :  { %v984_v39 = vpop.f32.mrf.mxu1 }
  0xd6   :  { %v433_v44 = vpop.f32.mrf.mxu1 }
  0xd8   :  { %v987_v51 = vpop.f32.mrf.mxu1 }
  0xda   :  { %v446_v59 = vpop.f32.mrf.mxu1 }
  0xdc   :  { %v988_v2 = vpop.f32.mrf.mxu1 }
  0xde   :  { %v449_v10 = vpop.f32.mrf.mxu1 }
  0xe0   :  { %v991_v17 = vpop.f32.mrf.mxu1 }
  0xe2   :  { %v895_v33 = vpop.f32.mrf.mxu0  ;;  %v462_v25 = vpop.f32.mrf.mxu1 }
  0xe4   :  { %v896_v35 = vpop.f32.mrf.mxu0 }
  0xe5   :  { %v897_v37 = vadd.f32 %v896_v35, %v895_v33 }
  0xe6   :  { %v898_v38 = vpop.f32.mrf.mxu0 }
  0xe7   :  { %v334_v40 = vadd.f32 %v897_v37, %v1359_v36 }
  0xe8   :  { %v899_v41 = vpop.f32.mrf.mxu0 }
  0xe9   :  { %v900_v42 = vadd.f32 %v899_v41, %v898_v38  ;;  %v431_v45 = vadd.f32 %v430_v34, %v334_v40 }
  0xea   :  { %v901_v43 = vpop.f32.mrf.mxu0 }
  0xeb   :  { %v337_v46 = vadd.f32 %v900_v42, %v1359_v36  ;;  %v493_v52 = vmax.f32 %v431_v45, 0.0 }
  0xec   :  { %v902_v47 = vpop.f32.mrf.mxu0 }
  0xed   :  { %v903_v48 = vadd.f32 %v902_v47, %v901_v43  ;;  %v434_v49 = vadd.f32 %v433_v44, %v337_v46 }
  0xee   :  { %v904_v50 = vpop.f32.mrf.mxu0 }
  0xef   :  { %v342_v53 = vadd.f32 %v903_v48, %v1359_v36  ;;  %v494_v54 = vmax.f32 %v434_v49, 0.0 }
  0xf0   :  { %v905_v55 = vpop.f32.mrf.mxu0 }
  0xf1   :  { %v509_v56 = vpack.c.bf16 %v494_v54, %v493_v52  ;;  %v906_v57 = vadd.f32 %v905_v55, %v904_v50  ;;  %v439_v60 = vadd.f32 %v983_v32, %v342_v53  ;;  %v992_v32 = vpop.f32.mrf.mxu1 }
  0xf2   :  { %v907_v58 = vpop.f32.mrf.mxu0 }
  0xf3   :  { %v345_v61 = vadd.f32 %v906_v57, %v1359_v36  ;;  %1005 = vmatprep.mubr.msk.bf16.mxu1 %vm556_vm2, %v509_v56  ;;  %v495_v3 = vmax.f32 %v439_v60, 0.0  ;;  %v465_v41 = vpop.f32.mrf.mxu1 }
  0xf4   :  { %v908_v62 = vpop.f32.mrf.mxu0 }
  0xf5   :  { %v442_v63 = vadd.f32 %v984_v39, %v345_v61  ;;  %v909_v0 = vadd.f32 %v908_v62, %v907_v58  ;;  %v995_v48 = vpop.f32.mrf.mxu1 }
  0xf6   :  { %v910_v1 = vpop.f32.mrf.mxu0 }
  0xf7   :  { %v496_v4 = vmax.f32 %v442_v63, 0.0  ;;  %v350_v5 = vadd.f32 %v909_v0, %v1359_v36  ;;  %v478_v56 = vpop.f32.mrf.mxu1 }
  0xf8   :  { %v911_v6 = vpop.f32.mrf.mxu0 }
  0xf9   :  { %v510_v7 = vpack.c.bf16 %v496_v4, %v495_v3  ;;  %v912_v8 = vadd.f32 %v911_v6, %v910_v1  ;;  %v447_v11 = vadd.f32 %v446_v59, %v350_v5  ;;  %v996_v63 = vpop.f32.mrf.mxu1 }
  0xfa   :  { %v913_v9 = vpop.f32.mrf.mxu0 }
  0xfb   :  { %1006 = vmatmul.mubr.msk.bf16.vlgmr.msra.gmra.mxu1 %vm556_vm2, %v510_v7  ;;  %v353_v12 = vadd.f32 %v912_v8, %v1359_v36  ;;  %v497_v18 = vmax.f32 %v447_v11, 0.0  ;;  %v481_v7 = vpop.f32.mrf.mxu1 }
  0xfc   :  { %v914_v13 = vpop.f32.mrf.mxu0 }
  0xfd   :  { %v915_v14 = vadd.f32 %v914_v13, %v913_v9  ;;  %v450_v15 = vadd.f32 %v449_v10, %v353_v12 }
  0xfe   :  { %v916_v16 = vpop.f32.mrf.mxu0 }
  0xff   :  { %v358_v19 = vadd.f32 %v915_v14, %v1359_v36  ;;  %v498_v20 = vmax.f32 %v450_v15, 0.0 }
 0x100   :  { %v917_v21 = vpop.f32.mrf.mxu0 }
 0x101   :  { %v511_v22 = vpack.c.bf16 %v498_v20, %v497_v18  ;;  %v918_v23 = vadd.f32 %v917_v21, %v916_v16  ;;  %v455_v26 = vadd.f32 %v987_v51, %v358_v19 }
 0x102   :  { %v919_v24 = vpop.f32.mrf.mxu0 }
 0x103   :  { %v361_v27 = vadd.f32 %v918_v23, %v1359_v36  ;;  %1009 = vmatprep.mubr.msk.bf16.mxu1 %vm556_vm2, %v511_v22  ;;  %v499_v33 = vmax.f32 %v455_v26, 0.0  ;;  %v1076_v26 = vmov 0.0  }
 0x104   :  { %v920_v28 = vpop.f32.mrf.mxu0  ;;  %1021 = vmatprep.subr.bf16.mxu0 %v1076_v26  ;;  %1037 = vmatprep.mubr.msk.bf16.mxu0 %vm1077_vm3, %v1076_v26 }
 0x105   :  { %v458_v29 = vadd.f32 %v988_v2, %v361_v27  ;;  %v921_v30 = vadd.f32 %v920_v28, %v919_v24  ;;  %v1078_v27 = vmov 0   ;;  %v16_v28 = vstv %s1453_s7 }
 0x106   :  { %v922_v31 = vpop.f32.mrf.mxu0  ;;  %1046 = vset.pattern.permute.xlu0 %v1078_v27  ;;  %17 = vst [vmem:[#allocation2] sm:$0x1] %v16_v28 }
 0x107   :  { %v500_v34 = vmax.f32 %v458_v29, 0.0  ;;  %v366_v35 = vadd.f32 %v921_v30, %v1359_v36  ;;  %v1396_v30 = vld [vmem:[%s1454_s5] ss:$0 sm:$0xff] }
 0x108   :  { %v923_v37 = vpop.f32.mrf.mxu0 }
 0x109   :  { %v512_v38 = vpack.c.bf16 %v500_v34, %v499_v33  ;;  %v924_v39 = vadd.f32 %v923_v37, %v922_v31  ;;  %v463_v42 = vadd.f32 %v462_v25, %v366_v35 }
 0x10a   :  { %v925_v40 = vpop.f32.mrf.mxu0 }
 0x10b   :  { %1010 = vmatmul.mubr.msk.bf16.gmra.mxu1 %vm556_vm2, %v512_v38  ;;  %v369_v43 = vadd.f32 %v924_v39, %v1359_v36  ;;  %v501_v49 = vmax.f32 %v463_v42, 0.0 }
 0x10c   :  { %v926_v44 = vpop.f32.mrf.mxu0 }
 0x10d   :  { %v927_v45 = vadd.f32 %v926_v44, %v925_v40  ;;  %v466_v46 = vadd.f32 %v465_v41, %v369_v43  ;;  %v770_v39 = vld [vmem:[#allocation2] sm:$0x1] }
 0x10e   :  { %v928_v47 = vpop.f32.mrf.mxu0 }
 0x10f   :  { %v374_v50 = vadd.f32 %v927_v45, %v1359_v36  ;;  %v502_v51 = vmax.f32 %v466_v46, 0.0 }
 0x110   :  { %v929_v52 = vpop.f32.mrf.mxu0 }
 0x111   :  { %v513_v53 = vpack.c.bf16 %v502_v51, %v501_v49  ;;  %v930_v54 = vadd.f32 %v929_v52, %v928_v47  ;;  %v471_v57 = vadd.f32 %v991_v17, %v374_v50 }
 0x112   :  { %v931_v55 = vpop.f32.mrf.mxu0 }
 0x113   :  { %v377_v58 = vadd.f32 %v930_v54, %v1359_v36  ;;  %1013 = vmatprep.mubr.msk.bf16.mxu1 %vm556_vm2, %v513_v53  ;;  %v503_v0 = vmax.f32 %v471_v57, 0.0 }
 0x114   :  { %v932_v59 = vpop.f32.mrf.mxu0 }
 0x115   :  { %v474_v60 = vadd.f32 %v992_v32, %v377_v58  ;;  %v933_v61 = vadd.f32 %v932_v59, %v931_v55 }
 0x116   :  { %v934_v62 = vpop.f32.mrf.mxu0 }
 0x117   :  { %v504_v1 = vmax.f32 %v474_v60, 0.0  ;;  %v382_v2 = vadd.f32 %v933_v61, %v1359_v36 }
 0x118   :  { %v935_v3 = vpop.f32.mrf.mxu0 }
 0x119   :  { %v514_v4 = vpack.c.bf16 %v504_v1, %v503_v0  ;;  %v936_v5 = vadd.f32 %v935_v3, %v934_v62  ;;  %v479_v8 = vadd.f32 %v478_v56, %v382_v2 }
 0x11a   :  { %v937_v6 = vpop.f32.mrf.mxu0 }
 0x11b   :  { %1014 = vmatmul.mubr.msk.bf16.gmra.mxu1 %vm556_vm2, %v514_v4  ;;  %v385_v9 = vadd.f32 %v936_v5, %v1359_v36  ;;  %v505_v14 = vmax.f32 %v479_v8, 0.0 }
 0x11c   :  { %v938_v10 = vpop.f32.mrf.mxu0 }
 0x11d   :  { %v939_v11 = vadd.f32 %v938_v10, %v937_v6  ;;  %v482_v12 = vadd.f32 %v481_v7, %v385_v9 }
 0x11e   :  { %v940_v13 = vpop.f32.mrf.mxu0 }
 0x11f   :  { %v390_v15 = vadd.f32 %v939_v11, %v1359_v36  ;;  %v506_v16 = vmax.f32 %v482_v12, 0.0 }
 0x120   :  { %v941_v17 = vpop.f32.mrf.mxu0 }
 0x121   :  { %v515_v18 = vpack.c.bf16 %v506_v16, %v505_v14  ;;  %v942_v19 = vadd.f32 %v941_v17, %v940_v13  ;;  %v487_v20 = vadd.f32 %v995_v48, %v390_v15 }
 0x123   :  { %v393_v21 = vadd.f32 %v942_v19, %v1359_v36  ;;  %1017 = vmatprep.mubr.msk.bf16.mxu1 %vm556_vm2, %v515_v18  ;;  %v507_v23 = vmax.f32 %v487_v20, 0.0  ;;  %v18_v36 = vstv %s1452_s8 }
 0x124   :  { %19 = vst [vmem:[#allocation3] sm:$0x1] %v18_v36 }
 0x125   :  { %v490_v22 = vadd.f32 %v996_v63, %v393_v21 }
 0x127   :  { %v508_v24 = vmax.f32 %v490_v22, 0.0 }
 0x129   :  { %v516_v25 = vpack.c.bf16 %v508_v24, %v507_v23 }
 0x12b   :  { %1018 = vmatmul.mubr.msk.bf16.gmra.mxu1 %vm556_vm2, %v516_v25  ;;  %v781_v34 = vld [vmem:[#allocation3] sm:$0x1] }
 0x12c   :  { %784 = vperm.xlu0 %1046, %v781_v34   ;;  %v776_v34 = vlaneseq }
 0x130   :  { %773 = vperm.xlu0 %1046, %v770_v39  }
 0x1bb   :  { %v1007_v29 = vpop.f32.mrf.mxu1 }
 0x1bc   :  { %v624_v32 = vadd.f32 %v1007_v29, %v1396_v30 }
 0x1bd   :  { %v615_v31 = vpop.f32.mrf.mxu1 }
 0x1be   :  { %v616_v35 = vadd.f32 %v1396_v30, %v615_v31  ;;  %v680_v40 = vmax.f32 %v624_v32, 0.0 }
 0x1bf   :  { %v1008_v33 = vpop.f32.mrf.mxu1 }
 0x1c0   :  { %v627_v37 = vadd.f32 %v1008_v33, %v1396_v30  ;;  %v678_v43 = vmax.f32 %v616_v35, 0.0  ;;  %v702_v33 = vld [vmem:[%s1455_s6] sm:$0xf]  ;;  %v777_v35 = vshrl.u32 %v776_v34, 7 }
 0x1c1   :  { %v618_v38 = vpop.f32.mrf.mxu1 }
 0x1c2   :  { %v681_v41 = vmax.f32 %v627_v37, 0.0  ;;  %v619_v42 = vadd.f32 %v1396_v30, %v618_v38  ;;  %v778_v37 = vsub.s32 0, %v777_v35  ;;  %v785_v38 = vpop.permute.xlu0 %784 }
 0x1c4   :  { %v1402_v44 = vpack.c.bf16 %v681_v41, %v680_v40  ;;  %v679_v45 = vmax.f32 %v619_v42, 0.0  ;;  %v790_v39 = vrot.slane %v785_v38, %v778_v37 }
 0x1c6   :  { %v1404_v46 = vpack.c.bf16 %v679_v45, %v678_v43  ;;  %v710_v32 = vsel %vm556_vm2, %v1402_v44, 0 }
 0x1cb   :  { %v1011_v47 = vpop.f32.mrf.mxu1 }
 0x1cc   :  { %v640_v19 = vadd.f32 %v1011_v47, %v1396_v30 }
 0x1cd   :  { %v631_v48 = vpop.f32.mrf.mxu1 }
 0x1ce   :  { %v684_v22 = vmax.f32 %v640_v19, 0.0  ;;  %v632_v25 = vadd.f32 %v1396_v30, %v631_v48 }
 0x1cf   :  { %v1012_v49 = vpop.f32.mrf.mxu1 }
 0x1d0   :  { %v643_v17 = vadd.f32 %v1012_v49, %v1396_v30  ;;  %v682_v28 = vmax.f32 %v632_v25, 0.0  ;;  %v774_v49 = vpop.permute.xlu0 %773 }
 0x1d1   :  { %v634_v50 = vpop.f32.mrf.mxu1 }
 0x1d2   :  { %v685_v20 = vmax.f32 %v643_v17, 0.0  ;;  %v635_v24 = vadd.f32 %v1396_v30, %v634_v50 }
 0x1d4   :  { %v697_v23 = vpack.c.bf16 %v685_v20, %v684_v22  ;;  %v683_v27 = vmax.f32 %v635_v24, 0.0 }
 0x1d6   :  { %v716_v36 = vsel %vm556_vm2, %v697_v23, 0  ;;  %v696_v29 = vpack.c.bf16 %v683_v27, %v682_v28 }
 0x1d8   :  { %v713_v31 = vsel %vm556_vm2, %v696_v29, 0 }
 0x1db   :  { %v1015_v51 = vpop.f32.mrf.mxu1 }
 0x1dc   :  { %v656_v7 = vadd.f32 %v1015_v51, %v1396_v30  ;;  %v779_v51 = vrot.slane %v774_v49, %v778_v37 }
 0x1dd   :  { %v647_v52 = vpop.f32.mrf.mxu1 }
 0x1de   :  { %v688_v10 = vmax.f32 %v656_v7, 0.0  ;;  %v648_v13 = vadd.f32 %v1396_v30, %v647_v52 }
 0x1df   :  { %v1016_v53 = vpop.f32.mrf.mxu1 }
 0x1e0   :  { %v659_v5 = vadd.f32 %v1016_v53, %v1396_v30  ;;  %v686_v16 = vmax.f32 %v648_v13, 0.0 }
 0x1e1   :  { %v650_v54 = vpop.f32.mrf.mxu1 }
 0x1e2   :  { %v689_v8 = vmax.f32 %v659_v5, 0.0  ;;  %v651_v12 = vadd.f32 %v1396_v30, %v650_v54 }
 0x1e4   :  { %v699_v11 = vpack.c.bf16 %v689_v8, %v688_v10  ;;  %v687_v14 = vmax.f32 %v651_v12, 0.0 }
 0x1e6   :  { %v722_v15 = vsel %vm556_vm2, %v699_v11, 0  ;;  %v698_v18 = vpack.c.bf16 %v687_v14, %v686_v16 }
 0x1e8   :  { %v719_v21 = vsel %vm556_vm2, %v698_v18, 0 }
 0x1eb   :  { %v1019_v55 = vpop.f32.mrf.mxu1 }
 0x1ec   :  { %v672_v57 = vadd.f32 %v1019_v55, %v1396_v30  ;;  %v111_v55 = vld [vmem:[%s1456_s0] sm:$0x1] }
 0x1ed   :  { %v663_v56 = vpop.f32.mrf.mxu1 }
 0x1ee   :  { %v692_v61 = vmax.f32 %v672_v57, 0.0  ;;  %v664_v0 = vadd.f32 %v1396_v30, %v663_v56 }
 0x1ef   :  { %v1020_v58 = vpop.f32.mrf.mxu1 }
 0x1f0   :  { %v675_v59 = vadd.f32 %v1020_v58, %v1396_v30  ;;  %v690_v4 = vmax.f32 %v664_v0, 0.0 }
 0x1f1   :  { %v666_v60 = vpop.f32.mrf.mxu1 }
 0x1f2   :  { %v693_v62 = vmax.f32 %v675_v59, 0.0  ;;  %v667_v63 = vadd.f32 %v1396_v30, %v666_v60  ;;  %v707_v30 = vsel %vm556_vm2, %v1404_v46, 0  ;;  %v1079_v46 = vmov 1966171168  }
 0x1f3   :  { %v798_v47 = vunpack.c.l.s4 %v1079_v46 }
 0x1f4   :  { %v701_v1 = vpack.c.bf16 %v693_v62, %v692_v61  ;;  %v691_v2 = vmax.f32 %v667_v63, 0.0 }
 0x1f5   :  { %v799_v48 = vunpack.c.0.s8 %v798_v47 }
 0x1f6   :  { %v728_v3 = vsel %vm556_vm2, %v701_v1, 0  ;;  %v700_v6 = vpack.c.bf16 %v691_v2, %v690_v4 }
 0x1f7   :  { %1022 = vmatpush3.bf16.xpose.msra.mxu0 %v728_v3  ;;  %v802_v50 = vsub.s32 %v799_v48, %v777_v35 }
 0x1f8   :  { %1023 = vmatprep.subr.bf16.mxu0 %v1076_v26  ;;  %v725_v9 = vsel %vm556_vm2, %v700_v6, 0 }
 0x1ff   :  { %1024 = vmatpush3.bf16.xpose.msra.mxu0 %v725_v9 }
 0x200   :  { %1025 = vmatprep.subr.bf16.mxu0 %v1076_v26 }
 0x207   :  { %1026 = vmatpush3.bf16.xpose.msra.mxu0 %v722_v15 }
 0x208   :  { %1027 = vmatprep.subr.bf16.mxu0 %v1076_v26 }
 0x20f   :  { %1028 = vmatpush3.bf16.xpose.msra.mxu0 %v719_v21 }
 0x210   :  { %1029 = vmatprep.subr.bf16.mxu0 %v1076_v26 }
 0x217   :  { %1030 = vmatpush3.bf16.xpose.msra.mxu0 %v716_v36 }
 0x218   :  { %1031 = vmatprep.subr.bf16.mxu0 %v1076_v26 }
 0x21f   :  { %1032 = vmatpush3.bf16.xpose.msra.mxu0 %v713_v31 }
 0x220   :  { %1033 = vmatprep.subr.bf16.mxu0 %v1076_v26 }
 0x227   :  { %1034 = vmatpush3.bf16.xpose.msra.mxu0 %v710_v32 }
 0x228   :  { %1035 = vmatprep.subr.bf16.mxu0 %v1076_v26 }
 0x22f   :  { %1036 = vmatpush3.bf16.xpose.msra.mxu0 %v707_v30 }
 0x236   :  { %1038 = vmatmul.mubr.msk.bf16.vlgmr.msra.gmra.mxu0 %vm556_vm2, %v702_v33 }
 0x2f6   :  { %v764_v40 = vpop.f32.mrf.mxu0 }
 0x2f7   :  { %v791_v41 = vadd.f32 %v790_v39, %v764_v40  ;;  %v780_v53 = vadd.f32 %v779_v51, %v764_v40 }
 0x2f8   :  { %v1039_v42 = vpop.f32.mrf.mxu0 }
 0x2f9   :  { %v792_v43 = vsub.f32 0.0, %v791_v41  ;;  %v795_v57 = vsub.f32 %v111_v55, %v780_v53 }
 0x2fa   :  { %v767_v26 = vpop.f32.mrf.mxu0 }
 0x2fb   :  { %v793_v44 = vmul.f32 1.442695, %v792_v43 }
 0x2fc   :  { %v1040_v45 = vpop.f32.mrf.mxu0 }
 0x2fd   :  { %1070 = vpow2.f32 %v793_v44 }
 0x30a   :  { %v1071_v52 = vpop.eup %1070 }
 0x30b   :  { %v803_v54 = vrot.slane %v1071_v52, %v802_v50 }
 0x30d   :  { %v804_v56 = vcombine.high %v803_v54, %v803_v54 }
 0x30f   :  { %v811_v58 = vrot.slane %v804_v56, %v802_v50 }
 0x311   :  { %v813_v59 = vmul.f32 %v811_v58, %v795_v57 }
 0x313   :  { %1072 = vtanh.f32 %v813_v59 }
 0x320   :  { %v1073_v60 = vpop.eup %1072 }
 0x321   :  { %815 = vst [vmem:[%s1457_s9] sm:$0x1] %v1073_v60  ;;  %v816_v61 = vmul.f32 %v1073_v60, %v1073_v60 }
 0x323   :  { %v817_v62 = vsub.f32 1.0, %v816_v61 }
 0x325   :  { %v818_v63 = vadd.f32 1e-06, %v817_v62 }
 0x327   :  { %1074 = vlog2.f32 %v818_v63 }
 0x334   :  { %v1075_v0 = vpop.eup %1074 }
 0x335   :  { %v820_v1 = vmul.f32 0.6931472, %v1075_v0 }
 0x337   :  { %v825_v2 = vrot.slane %v820_v1, %v778_v37 }
 0x339   :  { %v827_v3 = vadd.f32 %v825_v2, %v792_v43 }
 0x33b   :  { %828 = vst [vmem:[%s1458_s10 - $0x1] sm:$0x2] %v827_v3 }

</bundles_post_ra>
